<compile_context>
chip_gen: v7x
topology: tpu7x:2x2x1
jax: 0.10.0
libtpu: 0.0.40
codegen_flags: <defaults>
</compile_context>

<pallas_src>
import math

import jax
import jax.numpy as jnp
from jax.experimental import pallas as pl
from jax.experimental.pallas import tpu as pltpu


def _round_up(a, b):
    return (a + b - 1) // b * b


def _balanced_tile(dim, max_tile, align):
    """Largest aligned tile <= max_tile such that padding is ~one align unit."""
    dim_aligned = _round_up(max(dim, 1), align)
    if dim_aligned <= max_tile:
        return dim_aligned
    nblocks = math.ceil(dim_aligned / max_tile)
    return _round_up(math.ceil(dim_aligned / nblocks), align)


def _softplus_f32(z):
    # PyTorch Softplus semantics (beta=1, threshold=20), computed in f32.
    sp = jnp.log1p(jnp.exp(jnp.minimum(z, 20.0)))
    return jnp.where(z > 20.0, z, sp)


def _mlp_kernel_out_acc(x_ref, w_ref, b_ref, o_ref):
    # x_ref: (tm, tk)  w_ref: (tk, tn)  b_ref: (1, tn)  o_ref: (tm, tn) f32
    # Output block index map ignores k -> block stays resident across the K
    # loop, so accumulate straight into it (no separate scratch needed).
    k = pl.program_id(2)

    @pl.when(k == 0)
    def _():
        o_ref[...] = jnp.zeros_like(o_ref)

    o_ref[...] += jnp.dot(x_ref[...], w_ref[...],
                          preferred_element_type=jnp.float32)

    @pl.when(k == pl.num_programs(2) - 1)
    def _():
        z = o_ref[...] + b_ref[...].astype(jnp.float32)
        o_ref[...] = _softplus_f32(z)


def _mlp_kernel_scratch_acc(x_ref, w_ref, b_ref, o_ref, acc_ref):
    # Variant with an f32 VMEM accumulator for non-f32 output dtypes.
    k = pl.program_id(2)

    @pl.when(k == 0)
    def _():
        acc_ref[...] = jnp.zeros_like(acc_ref)

    acc_ref[...] += jnp.dot(x_ref[...], w_ref[...],
                            preferred_element_type=jnp.float32)

    @pl.when(k == pl.num_programs(2) - 1)
    def _():
        z = acc_ref[...] + b_ref[...].astype(jnp.float32)
        o_ref[...] = _softplus_f32(z).astype(o_ref.dtype)


def prepare_mlp_params(weight, bias, *, tn_max=1024, tk_max=1024,
                       compute_dtype=None):
    """Once-per-model parameter preparation (hoisted out of the call path).

    weight: (mlp_dim, input_dim) as in torch nn.Linear.  Stored transposed as
    (input_dim, mlp_dim) = (K, N) so the kernel runs a plain NN matmul on the
    MXU, padded to the tile grid and optionally cast to `compute_dtype`
    (e.g. jnp.bfloat16 to halve DMA bytes and use the bf16 MXU).
    """
    mlp_dim, input_dim = weight.shape
    w_dtype = compute_dtype if compute_dtype is not None else weight.dtype

    tn = _balanced_tile(mlp_dim, tn_max, 128)   # lane-dense output tiles
    tk = _balanced_tile(input_dim, tk_max, 128)
    Np = _round_up(mlp_dim, tn)
    Kp = _round_up(input_dim, tk)

    w_t = jnp.asarray(weight, w_dtype).T        # (K, N), done once at init
    if (Kp, Np) != (input_dim, mlp_dim):
        w_t = jnp.pad(w_t, ((0, Kp - input_dim), (0, Np - mlp_dim)))

    b2 = jnp.asarray(bias, jnp.float32).reshape(1, mlp_dim)
    if Np != mlp_dim:
        b2 = jnp.pad(b2, ((0, 0), (0, Np - mlp_dim)))

    return dict(w_t=w_t, b=b2, mlp_dim=mlp_dim, input_dim=input_dim,
                tn=tn, tk=tk, Np=Np, Kp=Kp, compute_dtype=compute_dtype)


def mlp_block(x, params, *, tm_max=1024):
    """y = softplus(x @ W^T + b) for x: (..., input_dim)."""
    input_dim = params["input_dim"]
    mlp_dim = params["mlp_dim"]
    tn, tk, Np, Kp = params["tn"], params["tk"], params["Np"], params["Kp"]
    w_t, b2 = params["w_t"], params["b"]
    compute_dtype = params["compute_dtype"]

    assert x.shape[-1] == input_dim
    lead = x.shape[:-1]
    M = 1
    for d in lead:
        M *= d

    x_dtype = compute_dtype if compute_dtype is not None else x.dtype
    out_dtype = x.dtype
    sub = 8 if jnp.dtype(x_dtype).itemsize >= 4 else 16  # sublane packing

    tm = _balanced_tile(M, tm_max, sub)
    Mp = _round_up(M, tm)

    # v7x megacore: make sure the "parallel" (i, j) axes expose >= 2 blocks so
    # both TensorCores get work.  Split M (cheap; never touches the
    # pre-padded weight layout).
    if (Mp // tm) * (Np // tn) < 2 and M >= 2 * sub:
        tm = _round_up(math.ceil(M / 2), sub)
        Mp = _round_up(M, tm)

    x2 = jnp.asarray(x, x_dtype).reshape(M, input_dim)
    if (Mp, Kp) != (M, input_dim):
        x2 = jnp.pad(x2, ((0, Mp - M), (0, Kp - input_dim)))

    grid = (Mp // tm, Np // tn, Kp // tk)
    grid_i, grid_j = grid[0], grid[1]

    use_out_acc = (out_dtype == jnp.float32)
    kernel = _mlp_kernel_out_acc if use_out_acc else _mlp_kernel_scratch_acc
    scratch = [] if use_out_acc else [pltpu.VMEM((tm, tn), jnp.float32)]

    in_bytes = jnp.dtype(x_dtype).itemsize
    out_bytes = jnp.dtype(out_dtype).itemsize

    # Explicit scoped-VMEM budget: double-buffered x/w/out (+ f32 acc if any),
    # with margin; stays well under v7x's 64 MiB physical VMEM.
    vmem_need = (2 * (tm * tk + tk * tn) * in_bytes
                 + 2 * tn * 4
                 + 2 * tm * tn * out_bytes
                 + (0 if use_out_acc else tm * tn * 4))
    vmem_limit = min(max(int(vmem_need * 1.25) + (4 << 20), 32 << 20), 48 << 20)

    # Advisory cost: x is re-read grid_j times, W re-read grid_i times.
    cost = pl.CostEstimate(
        flops=2 * Mp * Kp * Np,
        bytes_accessed=(grid_j * Mp * Kp * in_bytes
                        + grid_i * Kp * Np * in_bytes
                        + Np * 4 + Mp * Np * out_bytes),
        transcendentals=2 * Mp * Np)

    out2 = pl.pallas_call(
        kernel,
        out_shape=jax.ShapeDtypeStruct((Mp, Np), out_dtype),
        grid_spec=pltpu.PrefetchScalarGridSpec(
            num_scalar_prefetch=0,
            grid=grid,
            in_specs=[
                pl.BlockSpec((tm, tk), lambda i, j, k: (i, k)),   # x
                pl.BlockSpec((tk, tn), lambda i, j, k: (k, j)),   # W^T (K, N)
                pl.BlockSpec((1, tn), lambda i, j, k: (0, j)),    # bias
            ],
            out_specs=pl.BlockSpec((tm, tn), lambda i, j, k: (i, j)),
            scratch_shapes=scratch,
        ),
        compiler_params=pltpu.CompilerParams(
            dimension_semantics=("parallel", "parallel", "arbitrary"),
            vmem_limit_bytes=vmem_limit),
        cost_estimate=cost,
    )(x2, w_t, b2)

    out2 = out2[:M, :mlp_dim]
    return out2.reshape(*lead, mlp_dim)


if __name__ == "__main__":
    # Small shapes consistent with the module: x: (batch, seq, input_dim)
    batch, seq, input_dim, mlp_dim = 2, 8, 32, 64

    key = jax.random.PRNGKey(0)
    kx, kw, kb = jax.random.split(key, 3)

    x = jax.random.normal(kx, (batch, seq, input_dim), dtype=jnp.float32)
    # Deterministic "PyTorch-like" init: uniform(-1/sqrt(fan_in), 1/sqrt(fan_in))
    bound = 1.0 / (input_dim ** 0.5)
    weight = jax.random.uniform(kw, (mlp_dim, input_dim),
                                minval=-bound, maxval=bound,
                                dtype=jnp.float32)
    bias = jax.random.uniform(kb, (mlp_dim,),
                              minval=-bound, maxval=bound,
                              dtype=jnp.float32)

    # Parameter prep (transpose/pad/cast) happens once, outside the call path.
    params = prepare_mlp_params(weight, bias)   # compute_dtype=jnp.bfloat16 optional

    out = mlp_block(x, params)
    jax.block_until_ready(out)

    # Reference check in plain JAX
    z_ref = jnp.einsum("bsk,nk->bsn", x, weight) + bias
    ref = jnp.where(z_ref > 20.0, z_ref,
                    jnp.log1p(jnp.exp(jnp.minimum(z_ref, 20.0))))
    assert out.shape == (batch, seq, mlp_dim)
    assert jnp.allclose(out, ref, atol=1e-5, rtol=1e-5)

    print("KERNEL_OK")
</pallas_src>

<mosaic_0001>
module attributes {stable_mosaic.version = 11 : i64} {
  func.func @_mlp_kernel_out_acc(%arg0: i32, %arg1: i32, %arg2: i32, %arg3: memref<8x128xf32, #tpu.memory_space<vmem>>, %arg4: memref<128x128xf32, #tpu.memory_space<vmem>>, %arg5: memref<1x128xf32, #tpu.memory_space<vmem>>, %arg6: memref<8x128xf32, #tpu.memory_space<vmem>>) attributes {dimension_semantics = [#tpu.dimension_semantics<parallel>, #tpu.dimension_semantics<parallel>, #tpu.dimension_semantics<arbitrary>], iteration_bounds = array<i64: 2, 1, 1>, scalar_prefetch = 0 : i64, scratch_operands = 0 : i64, tpu.core_type = #tpu.core_type<tc>, window_params = [{transform_indices = @transform_0, window_bounds = array<i64: 8, 128>}, {transform_indices = @transform_1, window_bounds = array<i64: 128, 128>}, {transform_indices = @transform_2, window_bounds = array<i64: 1, 128>}, {transform_indices = @transform_3, window_bounds = array<i64: 8, 128>}]} {
    %c0_i32 = arith.constant 0 : i32
    %0 = arith.cmpi eq, %arg2, %c0_i32 : i32
    %1 = arith.extui %0 : i1 to i32
    %c0_i32_0 = arith.constant 0 : i32
    %2 = arith.cmpi ne, %1, %c0_i32_0 : i32
    scf.if %2 {
      %cst_10 = arith.constant 0.000000e+00 : f32
      %12 = vector.broadcast %cst_10 : f32 to vector<8x128xf32>
      %c0_11 = arith.constant 0 : index
      %c0_12 = arith.constant 0 : index
      %13 = vector.load %arg6[%c0_11, %c0_12] : memref<8x128xf32, #tpu.memory_space<vmem>>, vector<8x128xf32>
      tpu.vector_store %arg6[%c0_11, %c0_12], %12 {strides = array<i32>} : memref<8x128xf32, #tpu.memory_space<vmem>>, vector<8x128xf32>,
    } else {
    }
    %c0 = arith.constant 0 : index
    %c0_1 = arith.constant 0 : index
    %3 = vector.load %arg6[%c0, %c0_1] : memref<8x128xf32, #tpu.memory_space<vmem>>, vector<8x128xf32>
    %c0_2 = arith.constant 0 : index
    %c0_3 = arith.constant 0 : index
    %4 = vector.load %arg3[%c0_2, %c0_3] : memref<8x128xf32, #tpu.memory_space<vmem>>, vector<8x128xf32>
    %c0_4 = arith.constant 0 : index
    %c0_5 = arith.constant 0 : index
    %5 = vector.load %arg4[%c0_4, %c0_5] : memref<128x128xf32, #tpu.memory_space<vmem>>, vector<128x128xf32>
    %cst = arith.constant dense<0.000000e+00> : vector<8x128xf32>
    %6 = tpu.matmul %4, %5, %cst {dimension_numbers = #tpu.dot_dimension_numbers<[1], [0], [0], [1], [0, 0, 1, 1], [], []>} : vector<8x128xf32>, vector<128x128xf32>, vector<8x128xf32> -> vector<8x128xf32>
    %7 = arith.addf %3, %6 : vector<8x128xf32>
    %c0_6 = arith.constant 0 : index
    %c0_7 = arith.constant 0 : index
    %8 = vector.load %arg6[%c0_6, %c0_7] : memref<8x128xf32, #tpu.memory_space<vmem>>, vector<8x128xf32>
    tpu.vector_store %arg6[%c0_6, %c0_7], %7 {strides = array<i32>} : memref<8x128xf32, #tpu.memory_space<vmem>>, vector<8x128xf32>,
    %c0_i32_8 = arith.constant 0 : i32
    %9 = arith.cmpi eq, %arg2, %c0_i32_8 : i32
    %10 = arith.extui %9 : i1 to i32
    %c0_i32_9 = arith.constant 0 : i32
    %11 = arith.cmpi ne, %10, %c0_i32_9 : i32
    scf.if %11 {
      %c0_10 = arith.constant 0 : index
      %c0_11 = arith.constant 0 : index
      %12 = vector.load %arg6[%c0_10, %c0_11] : memref<8x128xf32, #tpu.memory_space<vmem>>, vector<8x128xf32>
      %c0_12 = arith.constant 0 : index
      %c0_13 = arith.constant 0 : index
      %13 = vector.load %arg5[%c0_12, %c0_13] : memref<1x128xf32, #tpu.memory_space<vmem>>, vector<1x128xf32>
      %14 = vector.broadcast %13 : vector<1x128xf32> to vector<8x128xf32>
      %15 = arith.addf %12, %14 : vector<8x128xf32>
      %cst_14 = arith.constant 2.000000e+01 : f32
      %16 = vector.broadcast %cst_14 : f32 to vector<8x128xf32>
      %17 = arith.minimumf %15, %16 : vector<8x128xf32>
      %18 = math.exp %17 : vector<8x128xf32>
      %19 = math.log1p %18 : vector<8x128xf32>
      %cst_15 = arith.constant 2.000000e+01 : f32
      %20 = vector.broadcast %cst_15 : f32 to vector<8x128xf32>
      %21 = arith.cmpf ogt, %15, %20 : vector<8x128xf32>
      %22 = arith.select %21, %15, %19 : vector<8x128xi1>, vector<8x128xf32>
      %c0_16 = arith.constant 0 : index
      %c0_17 = arith.constant 0 : index
      %23 = vector.load %arg6[%c0_16, %c0_17] : memref<8x128xf32, #tpu.memory_space<vmem>>, vector<8x128xf32>
      tpu.vector_store %arg6[%c0_16, %c0_17], %22 {strides = array<i32>} : memref<8x128xf32, #tpu.memory_space<vmem>>, vector<8x128xf32>,
    } else {
    }
    return
  }
  func.func @transform_0(%arg0: i32, %arg1: i32, %arg2: i32) -> (i32, i32) {
    %c0_i32 = arith.constant 0 : i32
    return %arg0, %arg2 : i32, i32
  }
  func.func @transform_1(%arg0: i32, %arg1: i32, %arg2: i32) -> (i32, i32) {
    %c0_i32 = arith.constant 0 : i32
    return %arg2, %arg1 : i32, i32
  }
  func.func @transform_2(%arg0: i32, %arg1: i32, %arg2: i32) -> (i32, i32) {
    %c0_i32 = arith.constant 0 : i32
    %c0_i32_0 = arith.constant 0 : i32
    return %c0_i32, %arg1 : i32, i32
  }
  func.func @transform_3(%arg0: i32, %arg1: i32, %arg2: i32) -> (i32, i32) {
    %c0_i32 = arith.constant 0 : i32
    return %arg0, %arg1 : i32, i32
  }
}

</mosaic_0001>

<bundles_post_ra>
// kernel: tpu_custom_call.1
= control target key start
LH: loop header
LB: loop body
LE: loop exit
PB: predicated region body
PF: predicated region fallthrough
CT: control target
= control target key end

     0   :  { %8 = vsyncpa [#allocation3], 0  ;;  %s1070_s0 = inlined_call_operand.hbm [shape: f32[16,128], index: 0, kind: input, shape index: {}]   ;;  %s1071_s1 = inlined_call_operand.hbm [shape: f32[128,128], index: 1, kind: input, shape index: {}]   ;;  %s1072_s2 = inlined_call_operand.vmem [shape: f32[1,128], index: 2, kind: input, shape index: {}]   ;;  %s1073_s3 = inlined_call_operand.hbm [shape: f32[16,128], index: 3, kind: output, shape index: {}]  }
   0x1   :  { %10 = vsyncpa [#allocation3 + $0x1], 0 }
   0x2   :  { %11 = vsyncpa [#allocation6], 0 }
   0x3   :  { %12 = vsyncpa [#allocation4], 0 }
   0x4   :  { %14 = vsyncpa [#allocation4 + $0x1], 0  ;;  %s846_s12 = smov 0   ;;  %s848_s13 = smov 0  }
   0x5   :  { %s850_s14 = smov 0   ;;  %s852_s15 = smov 0  }
   0x6   :  { %s854_s16 = smov 0   ;;  %s856_s17 = smov 0  }
   0x7 LB: > { %s497_s18 = sadd.s32 4294967295, %s816_s17   ;;  %s498_s19 = sadd.s32 4294967294, %s816_s17   ;;  %s816_s17 = sphi %s856_s17, %s20_s17   ;;  %s812_s16 = sphi %s854_s16, %s1097_s16   ;;  %s808_s15 = sphi %s852_s15, %s1096_s15   ;;  %s804_s14 = sphi %s850_s14, %s1095_s14   ;;  %s800_s13 = sphi %s848_s13, %s1094_s13   ;;  %s796_s12 = sphi %s846_s12, %s1093_s12  }
   0x8   : > { %p61_p0 = scmp.ne.s32.totalorder %s800_s13, %s796_s12  ;;  %p880_p1 = scmp.eq.s32.totalorder %s497_s18, 0 }
   0x9   : > { %p884_p2 = scmp.eq.s32.totalorder %s497_s18, 1  ;;  %p147_p3 = scmp.eq.s32.totalorder %s498_s19, 1 }
   0xa   : > { %s1078_s20 = scalar_select %p880_p1, 1, 0 }
   0xb   : > { %s1079_s21 = scalar_select %p884_p2, 1, 0 }
   0xc   : > { %p890_p4 = por %p880_p1, %p61_p0  ;;  %p499_p5 = scmp.ge.s32.totalorder %s816_s17, 1 }
   0xd   : > { %p895_p6 = por %p147_p3, %p61_p0  ;;  %p154_p7 = scmp.lt.s32.totalorder %s816_s17, 3 }
   0xe   : > { %s1080_s22 = scalar_select %p890_p4, 1, 0 }
   0xf   : > { %s1081_s23 = scalar_select %p895_p6, 1, 0 }
  0x10   : > { %p900_p8 = pnand %p499_p5, %p154_p7  ;;  %s818_s25 = smov [#allocation5]  }
  0x11   : > { %s170_s26 = sshll.u32 %s818_s25, 4  ;;  %s39_s28 = sadd.s32 1, %s812_s16  ;;  %s171_s26 = int_to_ptr.vmem [resolvable:$true] %s170_s26 }
  0x12   : > { %s1082_s24 = scalar_select %p900_p8, 1, 0 }
  0x13   : > { %p598_p9 = pneg %p900_p8  ;;  %s672_s4 = scalar_lea.hbm %s1071_s1, 2048 }
  0x14   : > { %p673_p12 = scmp.ne.s32.totalorder %s1071_s1, %s672_s4  ;;  %p679_p5 = scmp.lt.u32.totalorder %s672_s4, %s1071_s1 }
  0x15   : > { %p909_p11 = pnand %p598_p9, %p880_p1 }
  0x17   : > { %p674_p13 = pneg %p909_p11 }
  0x19   : > { %p675_p0 = pnand %p674_p13, %p673_p12 }
  0x1b   : > { %p676_p3 = pneg %p675_p0 }
  0x1d   : > { %p681_p7 = pnand %p679_p5, %p676_p3 }
  0x1f   : > { %684 = shalt.err (!%p681_p7)
}
  0x20   : > { %s685_s9 = scalar_lea.vmem %s171_s26, 2048  ;;  %p693_p1 = scmp.lt.s32.totalorder %s171_s26, %s171_s26 }
  0x21   : > { %p686_p9 = scmp.ne.s32.totalorder %s171_s26, %s685_s9  ;;  %p694_p4 = scmp.lt.s32.totalorder %s685_s9, %s685_s9 }
  0x23   : > { %p688_p10 = pnand %p686_p9, %p674_p13  ;;  %p695_p8 = por %p694_p4, %p693_p1 }
  0x25   : > { %p689_p6 = pneg %p688_p10 }
  0x27   : > { %p696_p2 = pnand %p695_p8, %p689_p6 }
  0x29   : > { %699 = shalt.err (!%p696_p2)
}
  0x2a   : > { %s819_s10 = smov 128   ;;  %s820_s11 = smov 8  }
  0x2b   : > { %601 = dma.hbm_to_vmem [thread:$0]  (!%p909_p11), %s1071_s1, 2048, %s171_s26, [#allocation6], %s819_s10, %s819_s10, %s820_s11  }
  0x2c   : > { %p41_p1 = scmp.ge.s32.totalorder %s39_s28, 2  ;;  %s48_s25 = sadd.s32 1, %s804_s14 }
  0x2d   : > { %p55_p2 = scmp.ne.s32.totalorder %s804_s14, %s800_s13  ;;  %p56_p4 = scmp.eq.s32.totalorder %s816_s17, 0 }
  0x2e   : > { %s1099_s28 = smov (%p41_p1, %s39_s28), 0  ;;  %p1085_p8 = scmp.ne.s32.totalorder %s1079_s21, 0 }
  0x2f   : > { %p936_p6 = por %p56_p4, %p55_p2  ;;  %s43_s27 = ssub.s32 %s812_s16, %s1099_s28 }
  0x30   : > { %p942_p10 = por %p1085_p8, %p55_p2  ;;  %p611_p12 = scmp.lt.s32.totalorder %s816_s17, 2 }
  0x31   : > { %p46_p11 = scmp.eq.s32.totalorder %s43_s27, 0  ;;  %s190_s26 = sand.u32 1, %s804_s14  }
  0x32   : > { %s503_s4 = sshll.u32 %s190_s26, 3  ;;  %s504_s6 = sshll.u32 %s812_s16, 7 }
  0x33   : > { %s951_s5 = scalar_select %p46_p11, %s804_s14, %s48_s25  }
  0x34   : > { %s957_s9 = scalar_lea.hbm %s1070_s0, %s504_s6  ;;  %s194_s21 = scalar_lea.vmem [#allocation2], %s503_s4 }
  0x35   : > { %s202_s10 = sshll.u32 %s194_s21, 4  ;;  %p963_p13 = pnand %p611_p12, %p936_p6  ;;  %s959_s10 = int_to_ptr.vmem [resolvable:$true] %s202_s10 }
  0x36   : > { %s191_s18 = scalar_lea.sflag [#allocation3], %s190_s26  ;;  %s700_s19 = scalar_lea.hbm %s957_s9, 128 }
  0x37   : > { %p701_p0 = scmp.ne.s32.totalorder %s957_s9, %s700_s19  ;;  %p702_p3 = pneg %p963_p13 }
  0x38   : > { %s705_s4 = scalar_lea.hbm %s1070_s0, 256  ;;  %p706_p9 = scmp.lt.u32.totalorder %s957_s9, %s1070_s0 }
  0x39   : > { %p703_p5 = pnand %p702_p3, %p701_p0  ;;  %p707_p1 = scmp.lt.u32.totalorder %s705_s4, %s700_s19 }
  0x3a   : > { %p709_p4 = scmp.lt.u32.totalorder %s700_s19, %s957_s9 }
  0x3b   : > { %p704_p7 = pneg %p703_p5  ;;  %p708_p2 = por %p707_p1, %p706_p9 }
  0x3d   : > { %p710_p6 = por %p709_p4, %p708_p2 }
  0x3f   : > { %p711_p8 = pnand %p710_p6, %p704_p7 }
  0x41   : > { %714 = shalt.err (!%p711_p8)
}
  0x42   : > { %s715_s26 = scalar_lea.vmem %s959_s10, 128  ;;  %s821_s7 = smov [#allocation2]  }
  0x43   : > { %p716_p12 = scmp.ne.s32.totalorder %s959_s10, %s715_s26  ;;  %s720_s8 = sshll.u32 %s821_s7, 4  ;;  %s721_s8 = int_to_ptr.vmem [resolvable:$false] %s720_s8 }
  0x44   : > { %s722_s21 = scalar_lea.vmem %s721_s8, 256  ;;  %p723_p5 = scmp.lt.s32.totalorder %s959_s10, %s721_s8 }
  0x45   : > { %p718_p11 = pnand %p716_p12, %p702_p3  ;;  %p724_p9 = scmp.lt.s32.totalorder %s722_s21, %s715_s26 }
  0x47   : > { %p719_p0 = pneg %p718_p11  ;;  %p725_p1 = por %p724_p9, %p723_p5 }
  0x49   : > { %p726_p2 = pnand %p725_p1, %p719_p0 }
  0x4b   : > { %729 = shalt.err (!%p726_p2)
}
  0x4c   : > { %605 = dma.hbm_to_vmem [thread:$0]  (!%p963_p13), %s957_s9, 128, %s959_s10, %s191_s18  }
  0x4d   : > { %p1088_p7 = scmp.ne.s32.totalorder %s1082_s24, 0 }
  0x4e   : > { %s995_s19 = sand.u32 (!%p1088_p7), 1, %s800_s13   ;;  %p1089_p3 = scmp.ne.s32.totalorder (!%p1088_p7), %s1080_s22, 0 }
  0x4f   : > { %211 = sbr.rel (%p1088_p7) target bundleno = 385 (0x181), region = 32  ;;  %s506_s25 = sshll.u32 (!%p1088_p7), %s995_s19, 3 }
  0x50   : > { %s214_s27 = scalar_lea.sflag (!%p1088_p7), [#allocation3], %s995_s19  ;;  %s1001_s4 = scalar_lea.vmem (!%p1088_p7), [#allocation2], %s506_s25 }
  0x56   : > { %783 = dma.done.wait (%p1089_p3), %s214_s27, 128  }
  0x57   : > { %785 = vsyncadd (%p1089_p3), %s214_s27, 4294967168  ;;  %p1090_p13 = scmp.ne.s32.totalorder %s1078_s20, 0 }
  0x59   : > { %787 = dma.done.wait (%p1090_p13), [#allocation6], 2048  }
  0x5a   : > { %789 = vsyncadd (%p1090_p13), [#allocation6], 4294965248  ;;  %v822_v0 = vmov 0.0|0.0   ;;  %vm823_vm0 = vmmov 0   ;;  %v824_v1 = vmov 0.0   ;;  %v258_v2 = vld [vmem:[#allocation5] sm:$0xff] }
  0x5b   : > { %566 = vmatprep.subr.bf16.mxu0 %v822_v0  ;;  %563 = vmatprep.mubr.msk.f32.mxu0 %vm823_vm0, %v824_v1  ;;  %v259_v3 = vld [vmem:[#allocation5 + $0x8] sm:$0xff]  ;;  %v260_v4 = vld [vmem:[#allocation5 + $0x10] sm:$0xff]  ;;  %v261_v6 = vld [vmem:[#allocation5 + $0x18] sm:$0xff]  ;;  %s511_s24 = sshll.u32 %s808_s15, 7  ;;  %s246_s9 = scalar_lea.vmem [#allocation7], %s506_s25 }
  0x5c   : > { %v567_v5 = vpack.c.bf16 %v259_v3, %v258_v2  ;;  %v570_v7 = vpack.c.bf16 %v261_v6, %v260_v4  ;;  %v262_v8 = vld [vmem:[#allocation5 + $0x20] sm:$0xff]  ;;  %v263_v9 = vld [vmem:[#allocation5 + $0x28] sm:$0xff]  ;;  %v264_v11 = vld [vmem:[#allocation5 + $0x30] sm:$0xff]  ;;  %s388_s10 = sshll.u32 %s246_s9, 4  ;;  %s1021_s29 = scalar_lea.hbm %s1073_s3, %s511_s24  ;;  %s1023_s10 = int_to_ptr.vmem [resolvable:$true] %s388_s10 }
  0x5d   : > { %v573_v10 = vpack.c.bf16 %v263_v9, %v262_v8  ;;  %v265_v12 = vld [vmem:[#allocation5 + $0x38] sm:$0xff]  ;;  %v266_v14 = vld [vmem:[#allocation5 + $0x40] sm:$0xff]  ;;  %v267_v15 = vld [vmem:[#allocation5 + $0x48] sm:$0xff]  ;;  %s374_s15 = scalar_lea.sflag [#allocation4], %s995_s19  ;;  %s730_s6 = scalar_lea.vmem %s1023_s10, 128 }
  0x5e   : > { %568 = vmatpush3.bf16.msra.mxu0 %v567_v5  ;;  %v576_v13 = vpack.c.bf16 %v265_v12, %v264_v11  ;;  %v579_v16 = vpack.c.bf16 %v267_v15, %v266_v14  ;;  %v268_v17 = vld [vmem:[#allocation5 + $0x50] sm:$0xff]  ;;  %v269_v18 = vld [vmem:[#allocation5 + $0x58] sm:$0xff]  ;;  %v270_v20 = vld [vmem:[#allocation5 + $0x60] sm:$0xff]  ;;  %p731_p4 = scmp.ne.s32.totalorder %s1023_s10, %s730_s6  ;;  %s825_s26 = smov [#allocation7]  }
  0x5f   : > { %569 = vmatprep.subr.bf16.mxu0 %v822_v0  ;;  %v582_v19 = vpack.c.bf16 %v269_v18, %v268_v17  ;;  %v271_v21 = vld [vmem:[#allocation5 + $0x68] sm:$0xff]  ;;  %v272_v23 = vld [vmem:[#allocation5 + $0x70] sm:$0xff]  ;;  %v273_v24 = vld [vmem:[#allocation5 + $0x78] sm:$0xff]  ;;  %s734_s7 = sshll.u32 %s825_s26, 4  ;;  %s735_s7 = int_to_ptr.vmem [resolvable:$false] %s734_s7 }
  0x60   : > { %v585_v22 = vpack.c.bf16 %v271_v21, %v270_v20  ;;  %v588_v25 = vpack.c.bf16 %v273_v24, %v272_v23  ;;  %v257_v26 = vld [vmem:[%s1001_s4] sm:$0xff]  ;;  %p732_p6 = pnand %p731_p4, %p942_p10  ;;  %s736_s8 = scalar_lea.vmem %s735_s7, 256 }
  0x61   : > { %v509_v28 = vld [vmem:[%s1072_s2] ss:$0 sm:$0xff]  ;;  %p737_p12 = scmp.lt.s32.totalorder %s1023_s10, %s735_s7  ;;  %p738_p11 = scmp.lt.s32.totalorder %s736_s8, %s730_s6 }
  0x62   : > { %571 = vmatpush3.bf16.msra.mxu0 %v570_v7  ;;  %p733_p8 = pneg %p732_p6 }
  0x63   : > { %572 = vmatprep.subr.bf16.mxu0 %v822_v0  ;;  %p739_p0 = por %p738_p11, %p737_p12 }
  0x65   : > { %p740_p5 = pnand %p739_p0, %p733_p8 }
  0x66   : > { %574 = vmatpush3.bf16.msra.mxu0 %v573_v10 }
  0x67   : > { %575 = vmatprep.subr.bf16.mxu0 %v822_v0 }
  0x6a   : > { %577 = vmatpush3.bf16.msra.mxu0 %v576_v13 }
  0x6b   : > { %578 = vmatprep.subr.bf16.mxu0 %v822_v0 }
  0x6e   : > { %580 = vmatpush3.bf16.msra.mxu0 %v579_v16 }
  0x6f   : > { %581 = vmatprep.subr.bf16.mxu0 %v822_v0 }
  0x72   : > { %583 = vmatpush3.bf16.msra.mxu0 %v582_v19 }
  0x73   : > { %584 = vmatprep.subr.bf16.mxu0 %v822_v0 }
  0x76   : > { %586 = vmatpush3.bf16.msra.mxu0 %v585_v22 }
  0x77   : > { %587 = vmatprep.subr.bf16.mxu0 %v822_v0 }
  0x7a   : > { %589 = vmatpush3.bf16.msra.mxu0 %v588_v25 }
  0x7d   : > { %564 = vmatmul.mubr.f32.vlgmr.msra.gmra.mrb[0].mxu0 %v257_v26 }
 0x150   : > { %v340_v27 = vpop.f32.mrb[0].mxu0 }
 0x151   : > { %v565_v29 = vpop.f32.mrb[1].mxu0  ;;  %v357_v30 = vadd.f32 %v509_v28, %v340_v27 }
 0x153   : > { %v358_v31 = vmin.f32 %v357_v30, 20.0  ;;  %vm370_vm2 = vcmp.gt.f32.partialorder %v357_v30, 20.0 }
 0x155   : > { %v359_v32 = vmul.f32 1.442695, %v358_v31 }
 0x157   : > { %668 = vpow2.f32 %v359_v32 }
 0x161   : > { %v669_v33 = vpop.eup %668 }
 0x162   : > { %v361_v34 = vadd.f32 1.0, %v669_v33  ;;  %v364_v35 = vmul.f32 -0.5, %v669_v33  ;;  %v367_v37 = vand.u32 2147483647, %v669_v33 }
 0x164   : > { %670 = vlog2.f32 %v361_v34  ;;  %v365_v36 = vadd.f32 1.0, %v364_v35  ;;  %vm368_vm1 = vcmp.lt.f32.partialorder %v367_v37, 0.0004427343 }
 0x166   : > { %v366_v40 = vmul.f32 %v669_v33, %v365_v36 }
 0x16e   : > { %v671_v38 = vpop.eup %670 }
 0x16f   : > { %v363_v39 = vmul.f32 0.6931472, %v671_v38 }
 0x171   : > { %v369_v41 = vsel %vm368_vm1, %v366_v40, %v363_v39 }
 0x172   : > { %v371_v42 = vsel %vm370_vm2, %v357_v30, %v369_v41 }
 0x173   : > { %372 = vst [vmem:[%s246_s9] sm:$0xff] %v371_v42 }
 0x174   : > { %743 = shalt.err (!%p740_p5)
}
 0x175   : > { %s744_s21 = scalar_lea.hbm %s1021_s29, 128  ;;  %s748_s27 = scalar_lea.hbm %s1073_s3, 256 }
 0x176   : > { %p745_p9 = scmp.ne.s32.totalorder %s1021_s29, %s744_s21  ;;  %p749_p7 = scmp.lt.u32.totalorder %s1021_s29, %s1073_s3 }
 0x177   : > { %p750_p3 = scmp.lt.u32.totalorder %s748_s27, %s744_s21  ;;  %p752_p4 = scmp.lt.u32.totalorder %s744_s21, %s1021_s29 }
 0x178   : > { %p746_p1 = pnand %p745_p9, %p942_p10 }
 0x179   : > { %p751_p13 = por %p750_p3, %p749_p7 }
 0x17a   : > { %p747_p2 = pneg %p746_p1 }
 0x17b   : > { %p753_p6 = por %p752_p4, %p751_p13 }
 0x17d   : > { %p754_p8 = pnand %p753_p6, %p747_p2 }
 0x17f   : > { %757 = shalt.err (!%p754_p8)
}
 0x180   : > { %596 = dma.vmem_to_hbm [thread:$0]  (%p942_p10), %s1023_s10, 128, %s1021_s29, %s374_s15  }
 0x181 PF: > { %s400_s22 = sand.u32 1, %s796_s12   ;;  %p1091_p12 = scmp.ne.s32.totalorder %s1081_s23, 0 }
 0x182   : > { %p1092_p11 = scmp.ge.s32.totalorder %s816_s17, 2  ;;  %s401_s24 = scalar_lea.sflag [#allocation4], %s400_s22 }
 0x184   : > { %p607_p0 = pnand %p1092_p11, %p1091_p12 }
 0x186   : > { %791 = dma.done.wait (!%p607_p0), %s401_s24, 128  }
 0x187   : > { %793 = vsyncadd (!%p607_p0), %s401_s24, 4294967168  ;;  %s20_s17 = sadd.s32 1, %s816_s17   ;;  %s1093_s12 = smov %s800_s13 }
 0x188   : > { %p17_p5 = scmp.ge.s32.totalorder %s20_s17, 4   ;;  %s1094_s13 = smov %s804_s14 }
 0x189   : > { %s1095_s14 = smov %s951_s5  ;;  %s1096_s15 = smov %s812_s16 }
 0x18a   : > { %s1097_s16 = smov %s1099_s28  ;;  %19 = sbr.rel (!%p17_p5) target bundleno = 7 (0x7), region = 93 }
 0x191   :  { %406 = vsyncpa [#allocation3], 1 }
 0x192   :  { %408 = vsyncpa [#allocation3 + $0x1], 1 }
 0x193   :  { %409 = vsyncpa [#allocation6], 1 }
 0x194   :  { %410 = vsyncpa [#allocation4], 1 }
 0x195   :  { %412 = vsyncpa [#allocation4 + $0x1], 1 }

</bundles_post_ra>
